<compile_context>
chip_gen: v7x
topology: tpu7x:2x2x1
jax: 0.10.0
libtpu: 0.0.40
codegen_flags: <defaults>
</compile_context>

<pallas_src>
import functools

import jax
import jax.numpy as jnp
from jax.experimental import pallas as pl
from jax.experimental.pallas import tpu as pltpu

_DEFAULT_TILE_B = 1024          # good on v6e; sweep 2048-4096 on v7x
_FEAT_TILE_VMEM_BUDGET = 8 << 20  # keep 2x double-buffered feat tile < ~8 MiB


def _trans_predictor_kernel(feat_ref, w_ref, b_ref, out_ref):
    # feat_ref: (TILE_B, nz), w_ref: (nz, 3), b_ref: (1, 3), out_ref: (TILE_B, 3)
    acc = jnp.dot(feat_ref[...], w_ref[...], preferred_element_type=jnp.float32)
    out_ref[...] = (acc + b_ref[...]).astype(out_ref.dtype)


def fuse_trans_params(w_xy, b_xy, w_z, b_z, fix_trans=False,
                      compute_dtype=jnp.float32):
    """One-time parameter fusion (call at setup, not per forward).

    w_xy: (2, nz), b_xy: (2,), w_z: (1, nz), b_z: (1,).
    Returns (w3, b3): (nz, 3) fused weight (in `compute_dtype`) and (1, 3) f32
    bias with the constant +1 offsets (x and z) folded in. fix_trans zeroes the
    z weights and makes the z bias exactly 1.0.
    """
    if fix_trans:
        w_z = jnp.zeros_like(w_z)
        b_z = jnp.zeros_like(b_z)
    w3 = jnp.concatenate([w_xy.T, w_z.T], axis=1).astype(compute_dtype)   # (nz, 3)
    offset = jnp.array([1.0, 0.0, 1.0], dtype=jnp.float32)
    b3 = (jnp.concatenate([b_xy, b_z]).astype(jnp.float32) + offset)[None, :]  # (1, 3)
    return w3, b3


def _pick_tile_b(B, nz, tile_b):
    """Static tile sizing: full-extent for small B, else multiple of 8 capped
    so the double-buffered feat tile fits comfortably in scoped VMEM (v5e)."""
    tile_b = min(tile_b, B)
    if tile_b >= B:
        return B                       # single full-extent block (any B)
    per_row_bytes = 2 * nz * 4         # double-buffered f32 feat row
    max_rows = max(8, _FEAT_TILE_VMEM_BUDGET // max(per_row_bytes, 1))
    tile_b = min(tile_b, max_rows)
    tile_b = max(8, (tile_b // 8) * 8)  # (8, 128) sublane constraint
    return tile_b


@functools.partial(jax.jit, static_argnames=("tile_b", "min_pallas_rows"))
def trans_predictor_forward(feat, w3, b3, tile_b=_DEFAULT_TILE_B,
                            min_pallas_rows=0):
    """feat: (B, nz); (w3, b3) from fuse_trans_params.

    Returns trans: (B, 3) = [xy0 + 1, xy1, 1 + z] (z == 1 if fix_trans was set
    when fusing the params).
    """
    B, nz = feat.shape
    feat_in = feat.astype(w3.dtype)    # optional bf16 input stream

    if B < min_pallas_rows:
        # Tiny batches: let XLA fuse the 3-column matmul into neighbors.
        return (jnp.dot(feat_in, w3, preferred_element_type=jnp.float32)
                + b3).astype(jnp.float32)

    tb = _pick_tile_b(B, nz, tile_b)
    grid_b = pl.cdiv(B, tb)

    itemsize = jnp.dtype(w3.dtype).itemsize
    cost = pl.CostEstimate(
        flops=2 * B * nz * 3,
        transcendentals=0,
        bytes_accessed=B * nz * itemsize + B * 3 * 4 + nz * 3 * itemsize + 3 * 4,
    )

    out = pl.pallas_call(
        _trans_predictor_kernel,
        out_shape=jax.ShapeDtypeStruct((B, 3), jnp.float32),
        grid=(grid_b,),
        in_specs=[
            pl.BlockSpec((tb, nz), lambda i: (i, 0)),   # feat tiles stream in
            pl.BlockSpec((nz, 3), lambda i: (0, 0)),    # fused weight, resident
            pl.BlockSpec((1, 3), lambda i: (0, 0)),     # fused bias, resident
        ],
        out_specs=pl.BlockSpec((tb, 3), lambda i: (i, 0)),
        compiler_params=pltpu.CompilerParams(
            dimension_semantics=("parallel",)),
        cost_estimate=cost,
    )(feat_in, w3, b3)

    return out


def reference_forward(feat, w_xy, b_xy, w_z, b_z, fix_trans=False):
    xy = feat @ w_xy.T + b_xy              # (B, 2)
    z = feat @ w_z.T + b_z                 # (B, 1)
    tx = xy[:, 0] + 1.0
    ty = xy[:, 1]
    tz = jnp.where(fix_trans, jnp.ones_like(z[:, 0]), 1.0 + z[:, 0])
    return jnp.stack([tx, ty, tz], axis=1)


if __name__ == "__main__":
    nz = 32

    key = jax.random.PRNGKey(0)
    k_feat, k_wxy, k_bxy, k_wz, k_bz, k_feat2 = jax.random.split(key, 6)

    # Deterministic init matching nn.init: normal_(0, 0.0001)
    w_xy = 1e-4 * jax.random.normal(k_wxy, (2, nz), dtype=jnp.float32)
    b_xy = 1e-4 * jax.random.normal(k_bxy, (2,), dtype=jnp.float32)
    w_z = 1e-4 * jax.random.normal(k_wz, (1, nz), dtype=jnp.float32)
    b_z = 1e-4 * jax.random.normal(k_bz, (1,), dtype=jnp.float32)

    # --- small batch, fix_trans=False ---
    B = 2
    feat = jax.random.normal(k_feat, (B, nz), dtype=jnp.float32)
    w3, b3 = fuse_trans_params(w_xy, b_xy, w_z, b_z, fix_trans=False)
    trans = jax.block_until_ready(trans_predictor_forward(feat, w3, b3))
    ref = reference_forward(feat, w_xy, b_xy, w_z, b_z, fix_trans=False)
    assert trans.shape == (B, 3)
    assert jnp.allclose(trans, ref, atol=1e-5, rtol=1e-5)

    # --- small batch, fix_trans=True ---
    w3_f, b3_f = fuse_trans_params(w_xy, b_xy, w_z, b_z, fix_trans=True)
    trans_f = jax.block_until_ready(trans_predictor_forward(feat, w3_f, b3_f))
    ref_f = reference_forward(feat, w_xy, b_xy, w_z, b_z, fix_trans=True)
    assert jnp.allclose(trans_f, ref_f, atol=1e-5, rtol=1e-5)

    # --- multi-tile grid with a partial last tile (exercises B-tiling path) ---
    B2 = 40
    feat2 = jax.random.normal(k_feat2, (B2, nz), dtype=jnp.float32)
    trans2 = jax.block_until_ready(
        trans_predictor_forward(feat2, w3, b3, tile_b=16))
    ref2 = reference_forward(feat2, w_xy, b_xy, w_z, b_z, fix_trans=False)
    assert trans2.shape == (B2, 3)
    assert jnp.allclose(trans2, ref2, atol=1e-5, rtol=1e-5)

    print("KERNEL_OK")
</pallas_src>

<mosaic_0001>
module attributes {stable_mosaic.version = 11 : i64} {
  func.func @_trans_predictor_kernel(%arg0: i32, %arg1: memref<2x32xf32, #tpu.memory_space<vmem>>, %arg2: memref<32x3xf32, #tpu.memory_space<vmem>>, %arg3: memref<1x3xf32, #tpu.memory_space<vmem>>, %arg4: memref<2x3xf32, #tpu.memory_space<vmem>>) attributes {dimension_semantics = [#tpu.dimension_semantics<parallel>], iteration_bounds = array<i64: 1>, scalar_prefetch = 0 : i64, scratch_operands = 0 : i64, tpu.core_type = #tpu.core_type<tc>, window_params = [{transform_indices = @transform_0, window_bounds = array<i64: 2, 32>}, {pipeline_mode = #tpu.pipeline_mode<synchronous>, transform_indices = @transform_1, window_bounds = array<i64: 32, 3>}, {pipeline_mode = #tpu.pipeline_mode<synchronous>, transform_indices = @transform_2, window_bounds = array<i64: 1, 3>}, {transform_indices = @transform_3, window_bounds = array<i64: 2, 3>}]} {
    %c0 = arith.constant 0 : index
    %c0_0 = arith.constant 0 : index
    %0 = vector.load %arg1[%c0, %c0_0] : memref<2x32xf32, #tpu.memory_space<vmem>>, vector<2x32xf32>
    %c0_1 = arith.constant 0 : index
    %c0_2 = arith.constant 0 : index
    %1 = vector.load %arg2[%c0_1, %c0_2] : memref<32x3xf32, #tpu.memory_space<vmem>>, vector<32x3xf32>
    %cst = arith.constant dense<0.000000e+00> : vector<2x3xf32>
    %2 = tpu.matmul %0, %1, %cst {dimension_numbers = #tpu.dot_dimension_numbers<[1], [0], [0], [1], [0, 0, 1, 1], [], []>} : vector<2x32xf32>, vector<32x3xf32>, vector<2x3xf32> -> vector<2x3xf32>
    %c0_3 = arith.constant 0 : index
    %c0_4 = arith.constant 0 : index
    %3 = vector.load %arg3[%c0_3, %c0_4] : memref<1x3xf32, #tpu.memory_space<vmem>>, vector<1x3xf32>
    %4 = vector.broadcast %3 : vector<1x3xf32> to vector<2x3xf32>
    %5 = arith.addf %2, %4 : vector<2x3xf32>
    %c0_5 = arith.constant 0 : index
    %c0_6 = arith.constant 0 : index
    %6 = vector.load %arg4[%c0_5, %c0_6] : memref<2x3xf32, #tpu.memory_space<vmem>>, vector<2x3xf32>
    tpu.vector_store %arg4[%c0_5, %c0_6], %5 {strides = array<i32>} : memref<2x3xf32, #tpu.memory_space<vmem>>, vector<2x3xf32>,
    return
  }
  func.func @transform_0(%arg0: i32) -> (i32, i32) {
    %c0_i32 = arith.constant 0 : i32
    %c0_i32_0 = arith.constant 0 : i32
    return %arg0, %c0_i32 : i32, i32
  }
  func.func @transform_1(%arg0: i32) -> (i32, i32) {
    %c0_i32 = arith.constant 0 : i32
    %c0_i32_0 = arith.constant 0 : i32
    %c0_i32_1 = arith.constant 0 : i32
    return %c0_i32, %c0_i32_0 : i32, i32
  }
  func.func @transform_2(%arg0: i32) -> (i32, i32) {
    %c0_i32 = arith.constant 0 : i32
    %c0_i32_0 = arith.constant 0 : i32
    %c0_i32_1 = arith.constant 0 : i32
    return %c0_i32, %c0_i32_0 : i32, i32
  }
  func.func @transform_3(%arg0: i32) -> (i32, i32) {
    %c0_i32 = arith.constant 0 : i32
    %c0_i32_0 = arith.constant 0 : i32
    return %arg0, %c0_i32 : i32, i32
  }
}

</mosaic_0001>

<bundles_post_ra>
// kernel: trans_predictor_forward.1
= control target key start
LH: loop header
LB: loop body
LE: loop exit
PB: predicated region body
PF: predicated region fallthrough
CT: control target
= control target key end

     0   :  { %v169_v3 = vmov 0.0|0.0   ;;  %vm170_vm0 = vmmov 0   ;;  %v171_v6 = vmov 0.0   ;;  %s223_s0 = inlined_call_operand.vmem [shape: f32[2,32], index: 0, kind: input, shape index: {}]   ;;  %s224_s1 = inlined_call_operand.vmem [shape: f32[32,3], index: 1, kind: input, shape index: {}]   ;;  %s225_s2 = inlined_call_operand.vmem [shape: f32[1,3], index: 2, kind: input, shape index: {}]   ;;  %s226_s3 = inlined_call_operand.hbm [shape: f32[2,3], index: 3, kind: output, shape index: {}]  }
   0x1   :  { %v16_v0 = vld [vmem:[%s224_s1] sm:$0xff]  ;;  %v17_v1 = vld [vmem:[%s224_s1 + $0x8] sm:$0xff]  ;;  %v18_v2 = vld [vmem:[%s224_s1 + $0x10] sm:$0xff]  ;;  %135 = vmatprep.subr.bf16.mxu0 %v169_v3  ;;  %132 = vmatprep.mubr.msk.f32.mxu0 %vm170_vm0, %v171_v6 }
   0x2   :  { %v136_v4 = vpack.c.bf16 %v17_v1, %v16_v0  ;;  %v19_v5 = vld [vmem:[%s224_s1 + $0x18] sm:$0xff] }
   0x3   :  { %8 = vsyncpa [#allocation3], 0  ;;  %v139_v7 = vpack.c.bf16 %v19_v5, %v18_v2  ;;  %v15_v8 = vld [vmem:[%s223_s0] sm:$0x3]  ;;  %vm27_vm1 = vcmask 261120   ;;  %s172_s24 = smov [#allocation2]  }
   0x4   :  { %137 = vmatpush3.bf16.msra.mxu0 %v136_v4  ;;  %v117_v9 = vld [vmem:[%s225_s2] ss:$0 sm:$0xff]  ;;  %s109_s1 = sshll.u32 %s172_s24, 4  ;;  %vm101_vm2 = vcmask 17408   ;;  %s110_s1 = int_to_ptr.vmem [resolvable:$true] %s109_s1 }
   0x5   :  { %138 = vmatprep.subr.bf16.mxu0 %v169_v3  ;;  %s145_s25 = scalar_lea.vmem %s110_s1, 32  ;;  %p150_p1 = scmp.lt.s32.totalorder %s110_s1, %s110_s1 }
   0x6   :  { %p146_p0 = scmp.ne.s32.totalorder %s110_s1, %s145_s25  ;;  %p151_p2 = scmp.lt.s32.totalorder %s145_s25, %s145_s25 }
   0x8   :  { %140 = vmatpush3.bf16.msra.mxu0 %v139_v7  ;;  %p152_p3 = por %p151_p2, %p150_p1 }
   0xa   :  { %p153_p4 = pnand %p152_p3, %p146_p0 }
   0xb   :  { %133 = vmatmul.mubr.msk.f32.vlgmr.msra.gmra.mrb[0].mxu0 %vm27_vm1, %v15_v8 }
  0xde   :  { %v97_v10 = vpop.f32.mrb[0].mxu0 }
  0xdf   :  { %v98_v11 = vadd.f32 %v117_v9, %v97_v10  ;;  %v134_v12 = vpop.f32.mrb[1].mxu0 }
  0xe1   :  { %102 = vst.msk [vmem:[#allocation2] sm:$0x3] %vm101_vm2, %v98_v11 }
  0xe2   :  { %156 = shalt.err (!%p153_p4)
}
  0xe3   :  { %s157_s27 = scalar_lea.hbm %s226_s3, 32 }
  0xe4   :  { %p158_p5 = scmp.ne.s32.totalorder %s226_s3, %s157_s27  ;;  %p161_p6 = scmp.lt.u32.totalorder %s157_s27, %s226_s3 }
  0xe6   :  { %p163_p7 = pnand %p161_p6, %p158_p5 }
  0xe8   :  { %166 = shalt.err (!%p163_p7)
}
  0xe9   :  { %112 = dma.vmem_to_hbm [thread:$0]  %s110_s1, 32, %s226_s3, [#allocation3]  }
  0xea   :  { %167 = dma.done.wait [#allocation3], 32  }
  0xeb   :  { %168 = vsyncadd [#allocation3], 4294967264 }
  0xec   :  { %116 = vsyncpa [#allocation3], 1 }

</bundles_post_ra>
